<compile_context>
chip_gen: v7x
topology: tpu7x:2x2x1
jax: 0.10.0
libtpu: 0.0.40
codegen_flags: <defaults>
</compile_context>

<pallas_src>
import functools
import math

import jax
import jax.numpy as jnp
from jax.experimental import pallas as pl
from jax.experimental.pallas import tpu as pltpu


# ---------------------------------------------------------------------------
# Kernel
# ---------------------------------------------------------------------------

_ACTIVATIONS = {
    "relu": lambda x: jnp.maximum(x, 0.0),
    "tanh": jnp.tanh,          # EUP transcendental, free VLIW slot in-kernel
    "sigmoid": jax.nn.sigmoid, # EUP transcendental
    "identity": lambda x: x,
}


def _graphite_kernel(w_ref, out_ref, *, activation):
    """w_ref: (r, k2, k1) VMEM block; out_ref: (k2, k1) VMEM block.

    sum_i (W[i] + sum_j W[j]) == (r + 1) * sum_j W[j]  -- algebraically exact.
    Reduction over the leading axis lowers to (r-1) VPU vector adds (no XLU).
    """
    r = w_ref.shape[0]
    w_sum = jnp.sum(w_ref[...], axis=0)                      # (k2, k1)
    act = _ACTIVATIONS[activation]
    out_ref[...] = act(jnp.float32(r + 1) * w_sum).astype(out_ref.dtype)


# ---------------------------------------------------------------------------
# Wrappers
# ---------------------------------------------------------------------------

def multi_relation_graphite_layer(Z, H, R, W, activation="relu"):
    """Single-layer forward, mirroring MultiRelationGraphiteLayer.forward(Z, H).

    Z, H, R are accepted for API parity with the PyTorch module but are dead
    with respect to the output (see header), so they are intentionally NOT
    passed into the Pallas call (avoids pointless HBM->VMEM DMA).
    """
    n, k0 = Z.shape
    n_h, k1_h = H.shape
    r, k2, k1 = W.shape
    assert n_h == n and k1_h == k1 and R.shape == (r, k0)
    del Z, H, R  # dead inputs

    kernel = functools.partial(_graphite_kernel, activation=activation)
    return pl.pallas_call(
        kernel,
        # Whole-array blocks resident in VMEM; no grid, no index_maps.
        in_specs=[pl.BlockSpec(memory_space=pltpu.MemorySpace.VMEM)],
        out_specs=pl.BlockSpec(memory_space=pltpu.MemorySpace.VMEM),
        out_shape=jax.ShapeDtypeStruct((k2, k1), jnp.float32),
        cost_estimate=pl.CostEstimate(
            flops=2 * r * k2 * k1,
            transcendentals=0 if activation in ("relu", "identity") else k2 * k1,
            bytes_accessed=4 * (r + 1) * k2 * k1,
        ),
    )(W)


def multi_relation_graphite_layer_batched(W_stack, activation="relu"):
    """Batched forward for L independent layers: W_stack is (L, r, k2, k1).

    One pallas_call amortizes the launch / DMA-setup cost over all L layers;
    the L axis is marked "parallel" so both TensorCores are used on v7x.
    """
    L, r, k2, k1 = W_stack.shape
    kernel = functools.partial(_graphite_kernel, activation=activation)
    return pl.pallas_call(
        kernel,
        grid=(L,),
        in_specs=[
            # L dim squeezed (block size 1); kernel sees a (r, k2, k1) block.
            pl.BlockSpec((None, r, k2, k1), lambda i: (i, 0, 0, 0)),
        ],
        out_specs=pl.BlockSpec((None, k2, k1), lambda i: (i, 0, 0)),
        out_shape=jax.ShapeDtypeStruct((L, k2, k1), jnp.float32),
        compiler_params=pltpu.CompilerParams(
            dimension_semantics=("parallel",),  # v7x: shard L across both TCs
        ),
        cost_estimate=pl.CostEstimate(
            flops=L * 2 * r * k2 * k1,
            transcendentals=0 if activation in ("relu", "identity") else L * k2 * k1,
            bytes_accessed=4 * L * (r + 1) * k2 * k1,
        ),
    )(W_stack)


# ---------------------------------------------------------------------------
# Pure-JAX reference (exact transcription of the PyTorch forward)
# ---------------------------------------------------------------------------

def reference_forward(Z, H, R, W, activation="relu"):
    Zb = Z[None]                                              # (1, n, k0)
    Zb = Zb / jnp.linalg.norm(Zb, ord=2, axis=1, keepdims=True)
    ZR = Zb * R[:, None, :]                                   # (r, n, k0) -- dead
    del ZR
    HW = W                                                    # chain_bmm no-op
    one_one_t_HW = jnp.sum(HW, axis=0, keepdims=True)         # (1, k2, k1)
    product = HW + one_one_t_HW                               # (r, k2, k1)
    return _ACTIVATIONS[activation](jnp.sum(product, axis=0))


if __name__ == "__main__":
    # Module hyperparameters (match the globals in the reference script).
    n, k0, k1, k2, r = 20, 6, 6, 6, 3
    L = 8  # number of independent layers batched into one pallas_call

    key = jax.random.PRNGKey(0)
    kZ, kH, kR, kW, kWs = jax.random.split(key, 5)

    # Inputs (torch.randn equivalents).
    Z = jax.random.normal(kZ, (n, k0), dtype=jnp.float32)
    H = jax.random.normal(kH, (n, k1), dtype=jnp.float32)

    # Parameters: uniform(-stdv, stdv) with stdv = 1/sqrt(param.size(1)).
    stdv_R = 1.0 / math.sqrt(k0)
    stdv_W = 1.0 / math.sqrt(k2)   # W has shape (r, k2, k1) -> size(1) == k2
    R = jax.random.uniform(kR, (r, k0), dtype=jnp.float32,
                           minval=-stdv_R, maxval=stdv_R)
    W = jax.random.uniform(kW, (r, k2, k1), dtype=jnp.float32,
                           minval=-stdv_W, maxval=stdv_W)
    W_stack = jax.random.uniform(kWs, (L, r, k2, k1), dtype=jnp.float32,
                                 minval=-stdv_W, maxval=stdv_W)

    # --- Single-layer path (exact module.forward parity) -------------------
    out = jax.block_until_ready(multi_relation_graphite_layer(Z, H, R, W))
    ref = reference_forward(Z, H, R, W)
    assert out.shape == (k2, k1)
    assert jnp.allclose(out, ref, atol=1e-5, rtol=1e-5), "single-layer mismatch"

    # --- Batched path (one pallas_call for L layers) -----------------------
    out_b = jax.block_until_ready(multi_relation_graphite_layer_batched(W_stack))
    ref_b = jax.vmap(lambda w: reference_forward(Z, H, R, w))(W_stack)
    assert out_b.shape == (L, k2, k1)
    assert jnp.allclose(out_b, ref_b, atol=1e-5, rtol=1e-5), "batched mismatch"

    # TODO(synk): the module's `activation` constructor arg is arbitrary; only
    # relu/tanh/sigmoid/identity are supported in-kernel here (default relu).

    print("KERNEL_OK")
</pallas_src>

<mosaic_0001>
module attributes {stable_mosaic.version = 11 : i64} {
  func.func @_graphite_kernel(%arg0: memref<3x6x6xf32, #tpu.memory_space<vmem>>, %arg1: memref<6x6xf32, #tpu.memory_space<vmem>>) attributes {dimension_semantics = [], scalar_prefetch = 0 : i64, scratch_operands = 0 : i64, tpu.core_type = #tpu.core_type<tc>} {
    %c0 = arith.constant 0 : index
    %c0_0 = arith.constant 0 : index
    %c0_1 = arith.constant 0 : index
    %0 = vector.load %arg0[%c0, %c0_0, %c0_1] : memref<3x6x6xf32, #tpu.memory_space<vmem>>, vector<3x6x6xf32>
    %cst = arith.constant dense<0.000000e+00> : vector<6x6xf32>
    %1 = vector.multi_reduction <add>, %0, %cst [0] : vector<3x6x6xf32> to vector<6x6xf32>
    %cst_2 = arith.constant 4.000000e+00 : f32
    %2 = vector.broadcast %cst_2 : f32 to vector<6x6xf32>
    %3 = arith.mulf %2, %1 : vector<6x6xf32>
    %cst_3 = arith.constant 0.000000e+00 : f32
    %4 = vector.broadcast %cst_3 : f32 to vector<6x6xf32>
    %5 = arith.maximumf %3, %4 : vector<6x6xf32>
    %c0_4 = arith.constant 0 : index
    %c0_5 = arith.constant 0 : index
    %6 = vector.load %arg1[%c0_4, %c0_5] : memref<6x6xf32, #tpu.memory_space<vmem>>, vector<6x6xf32>
    tpu.vector_store %arg1[%c0_4, %c0_5], %5 {strides = array<i32>} : memref<6x6xf32, #tpu.memory_space<vmem>>, vector<6x6xf32>,
    return
  }
}

</mosaic_0001>

<bundles_post_ra>
// kernel: tpu_custom_call.1
= control target key start
LH: loop header
LB: loop body
LE: loop exit
PB: predicated region body
PF: predicated region fallthrough
CT: control target
= control target key end

     0   :  { %6 = vsyncpa [#allocation3], 0  ;;  %s140_s0 = inlined_call_operand.hbm [shape: f32[3,6,6], index: 0, kind: input, shape index: {}]   ;;  %s141_s1 = inlined_call_operand.hbm [shape: f32[6,6], index: 1, kind: output, shape index: {}]  }
   0x1   :  { %7 = vsyncpa [#allocation4], 0  ;;  %s102_s6 = smov [#allocation2]   ;;  %s54_s10 = scalar_lea.hbm %s140_s0, 384 }
   0x2   :  { %s13_s7 = sshll.u32 %s102_s6, 4  ;;  %p55_p0 = scmp.ne.s32.totalorder %s140_s0, %s54_s10  ;;  %s14_s7 = int_to_ptr.vmem [resolvable:$true] %s13_s7 }
   0x3   :  { %p58_p1 = scmp.lt.u32.totalorder %s54_s10, %s140_s0 }
   0x5   :  { %p60_p2 = pnand %p58_p1, %p55_p0 }
   0x7   :  { %63 = shalt.err (!%p60_p2)
}
   0x8   :  { %s64_s15 = scalar_lea.vmem %s14_s7, 384  ;;  %p69_p4 = scmp.lt.s32.totalorder %s14_s7, %s14_s7 }
   0x9   :  { %p65_p3 = scmp.ne.s32.totalorder %s14_s7, %s64_s15  ;;  %p70_p5 = scmp.lt.s32.totalorder %s64_s15, %s64_s15 }
   0xb   :  { %p71_p6 = por %p70_p5, %p69_p4 }
   0xd   :  { %p72_p7 = pnand %p71_p6, %p65_p3 }
   0xf   :  { %75 = shalt.err (!%p72_p7)
}
  0x10   :  { %s103_s16 = smov 128   ;;  %s104_s17 = smov 8  }
  0x11   :  { %19 = dma.hbm_to_vmem [thread:$0]  %s140_s0, 384, %s14_s7, [#allocation3], %s103_s16, %s103_s16, %s104_s17  }
  0x12   :  { %98 = dma.done.wait [#allocation3], 384  }
  0x13   :  { %99 = vsyncadd [#allocation3], 4294966912  ;;  %vm26_vm0 = vcmask 46080   ;;  %v23_v0 = vld [vmem:[#allocation2] sm:$0x3f]  ;;  %s105_s20 = smov [#allocation5]  }
  0x14   :  { %v24_v1 = vld [vmem:[#allocation2 + $0x8] sm:$0x3f]  ;;  %v25_v2 = vld [vmem:[#allocation2 + $0x10] sm:$0x3f]  ;;  %v27_v3 = vsel %vm26_vm0, %v23_v0, 0.0  ;;  %s41_s21 = sshll.u32 %s105_s20, 4  ;;  %s42_s21 = int_to_ptr.vmem [resolvable:$true] %s41_s21 }
  0x15   :  { %v28_v4 = vsel %vm26_vm0, %v24_v1, 0.0  ;;  %v30_v5 = vsel %vm26_vm0, %v25_v2, 0.0  ;;  %s76_s22 = scalar_lea.vmem %s42_s21, 128  ;;  %p81_p9 = scmp.lt.s32.totalorder %s42_s21, %s42_s21 }
  0x16   :  { %v29_v6 = vadd.f32 %v28_v4, %v27_v3  ;;  %p77_p8 = scmp.ne.s32.totalorder %s42_s21, %s76_s22  ;;  %p82_p10 = scmp.lt.s32.totalorder %s76_s22, %s76_s22 }
  0x18   :  { %v31_v7 = vadd.f32 %v30_v5, %v29_v6  ;;  %p83_p11 = por %p82_p10, %p81_p9 }
  0x1a   :  { %v32_v8 = vmul.f32 4.0, %v31_v7  ;;  %p84_p12 = pnand %p83_p11, %p77_p8 }
  0x1c   :  { %v33_v9 = vmax.f32 %v32_v8, 0.0 }
  0x1e   :  { %34 = vst.msk [vmem:[#allocation5] sm:$0x3f] %vm26_vm0, %v33_v9 }
  0x1f   :  { %87 = shalt.err (!%p84_p12)
}
  0x20   :  { %s88_s24 = scalar_lea.hbm %s141_s1, 128 }
  0x21   :  { %p89_p13 = scmp.ne.s32.totalorder %s141_s1, %s88_s24  ;;  %p92_p0 = scmp.lt.u32.totalorder %s88_s24, %s141_s1 }
  0x23   :  { %p94_p1 = pnand %p92_p0, %p89_p13 }
  0x25   :  { %97 = shalt.err (!%p94_p1)
}
  0x26   :  { %44 = dma.vmem_to_hbm [thread:$0]  %s42_s21, 128, %s141_s1, [#allocation4]  }
  0x27   :  { %100 = dma.done.wait [#allocation4], 128  }
  0x28   :  { %101 = vsyncadd [#allocation4], 4294967168 }
  0x29   :  { %48 = vsyncpa [#allocation3], 1 }
  0x2a   :  { %49 = vsyncpa [#allocation4], 1 }

</bundles_post_ra>
